<compile_context>
chip_gen: v6e
topology: v6e:2x2x1
jax: 0.10.0
libtpu: 0.0.40
codegen_flags: <defaults>
</compile_context>

<pallas_src>
import functools

import jax
import jax.numpy as jnp
from jax.experimental import pallas as pl
from jax.experimental.pallas import tpu as pltpu


def _round_up(x, m):
    return (x + m - 1) // m * m


def _device_kind():
    try:
        return jax.devices()[0].device_kind.lower()
    except Exception:
        return ""


def _generation_config():
    """Per-generation tile caps / VMEM budget / dtype capabilities."""
    kind = _device_kind()
    if "v6" in kind:        # v6e: 128 MiB VMEM, highest compute:BW ratio -> big tiles
        return dict(tm_cap=1024, tn_cap=512, tk_cap=512, vmem=96 * 1024 * 1024,
                    int8=True, two_core=False)
    if "v5" in kind:        # v5e/v5p: 128 MiB VMEM, int8 MXU at 2x bf16
        return dict(tm_cap=512, tn_cap=512, tk_cap=512, vmem=64 * 1024 * 1024,
                    int8=True, two_core=False)
    if "v7" in kind or "7x" in kind:   # v7x: only 64 MiB VMEM/TC, 2 TCs, no int MXU
        return dict(tm_cap=512, tn_cap=512, tk_cap=512, vmem=48 * 1024 * 1024,
                    int8=False, two_core=True)
    # Unknown / older generation: conservative defaults, no vmem override.
    return dict(tm_cap=512, tn_cap=256, tk_cap=256, vmem=None,
                int8=False, two_core=False)


def _pick_tile(dim, cap, align):
    """Largest tile (multiple of `align`, <= cap) whose padding waste stays small."""
    hi = max(align, min(cap // align, _round_up(dim, align) // align) * align)
    min_pad = min(_round_up(dim, t) for t in range(align, hi + 1, align))
    best = align
    for t in range(align, hi + 1, align):
        if _round_up(dim, t) * 8 <= min_pad * 9:   # <= 12.5% extra padded work
            best = t
    return best


def bit_sliced_linear_kernel(xq_ref, w_ref, b_ref, o_ref, *,
                             num_slices, compute_dtype, acc_dtype):
    """One (tm, tn) output tile, accumulated in-place over the k (in_features) axis."""
    k_idx = pl.program_id(2)

    # Bit extraction in registers (int32 shift/mask), cast to the MXU operand dtype
    # only at the dot.  Static unroll over the (small) slice count; per-slice dots
    # against static weight slices avoid any bits scratch / VMEM round-trip.
    xi = xq_ref[...].astype(jnp.int32)                               # (tm, tk)
    partial = None
    for s in range(num_slices):
        plane = ((xi >> s) & 1).astype(compute_dtype)                # (tm, tk)
        d = jnp.dot(plane, w_ref[s], preferred_element_type=acc_dtype)
        partial = d if partial is None else partial + d
    partial = partial.astype(o_ref.dtype)

    # Accumulate directly into the VMEM-resident output block; bias folded into the
    # k == 0 write (no separate accumulator scratch, no finalize pass).
    @pl.when(k_idx == 0)
    def _():
        o_ref[...] = partial + b_ref[...]

    @pl.when(k_idx > 0)
    def _():
        o_ref[...] += partial


def _bit_sliced_linear_impl(x, w_stack, b_stack, num_slices, tm, tn, tk, cfg, use_int8):
    M, K = x.shape
    S, K2, N = w_stack.shape
    assert S == num_slices and K2 == K

    if use_int8:
        # binary * 2**s fits int8 exactly only for num_slices <= 7.
        assert num_slices <= 7, "int8 operand path requires num_slices <= 7"
        w_dtype, compute_dtype, acc_dtype = jnp.int8, jnp.int8, jnp.int32
    else:
        # binary * 2**s (powers of two) is exact in bf16.
        w_dtype, compute_dtype, acc_dtype = jnp.bfloat16, jnp.bfloat16, jnp.float32

    # Tile selection: lane-dense (multiples of 128 on N/K), rows aligned to 32
    # (covers bf16/int8 sublane packing), largest tile under the per-generation cap
    # that does not blow up padding waste.
    tm = tm if tm is not None else _pick_tile(M, cfg["tm_cap"], 32)
    tn = tn if tn is not None else _pick_tile(N, cfg["tn_cap"], 128)
    tk = tk if tk is not None else _pick_tile(K, cfg["tk_cap"], 128)

    # v7x: two TensorCores share the grid via dimension_semantics; make sure the
    # parallel (m, n) axes expose at least 2 blocks so neither TC sits idle.
    if cfg["two_core"] and (_round_up(M, tm) // tm) * (_round_up(N, tn) // tn) < 2:
        if tn % 256 == 0:
            tn //= 2
        elif tm % 64 == 0:
            tm //= 2

    m_pad, n_pad, k_pad = _round_up(M, tm), _round_up(N, tn), _round_up(K, tk)

    # --- One-time operand prep (plain XLA) ------------------------------------
    norm = jnp.float32(2 ** num_slices - 1)
    # torch `.int()` truncates toward zero; XLA's f32->s32 convert does the same.
    xi = (x.astype(jnp.float32) * norm).astype(jnp.int32)
    # Quantized x fits int8 for num_slices <= 7 (assumes normalized inputs, |x*norm|<128).
    x_int_dtype = jnp.int8 if (2 ** num_slices - 1) <= 127 else jnp.int32
    xq = jnp.pad(xi, ((0, m_pad - M), (0, k_pad - K))).astype(x_int_dtype)

    sig = (2.0 ** jnp.arange(num_slices, dtype=jnp.float32)).reshape(-1, 1, 1)
    w_scaled = w_stack.astype(jnp.float32) * sig                       # (S, K, N), exact
    w_pad = jnp.pad(w_scaled, ((0, 0), (0, k_pad - K), (0, n_pad - N))).astype(w_dtype)

    b_comb = jnp.sum(b_stack.astype(jnp.float32) * sig, axis=0)        # (1, N)
    b_pad = jnp.pad(b_comb, ((0, 0), (0, n_pad - N)))

    grid = (m_pad // tm, n_pad // tn, k_pad // tk)
    kernel = functools.partial(bit_sliced_linear_kernel, num_slices=num_slices,
                               compute_dtype=compute_dtype, acc_dtype=acc_dtype)

    # Advisory cost hint so XLA schedules the surrounding prep / normalization well.
    cost = pl.CostEstimate(
        flops=int(2 * m_pad * n_pad * num_slices * k_pad),
        transcendentals=0,
        bytes_accessed=int(xq.size * xq.dtype.itemsize * grid[1]
                           + w_pad.size * w_pad.dtype.itemsize * grid[0]
                           + b_pad.size * 4 * grid[0]
                           + m_pad * n_pad * 4),
    )

    y_pad = pl.pallas_call(
        kernel,
        out_shape=jax.ShapeDtypeStruct((m_pad, n_pad), jnp.float32),
        grid_spec=pltpu.PrefetchScalarGridSpec(
            num_scalar_prefetch=0,
            grid=grid,
            in_specs=[
                pl.BlockSpec((tm, tk), lambda i, j, k: (i, k)),                 # quantized x
                pl.BlockSpec((num_slices, tk, tn), lambda i, j, k: (0, k, j)),  # scaled W slices
                pl.BlockSpec((1, tn), lambda i, j, k: (0, j)),                  # combined bias
            ],
            out_specs=pl.BlockSpec((tm, tn), lambda i, j, k: (i, j)),
        ),
        compiler_params=pltpu.CompilerParams(
            dimension_semantics=("parallel", "parallel", "arbitrary"),
            vmem_limit_bytes=cfg["vmem"],
        ),
        cost_estimate=cost,
    )(xq, w_pad, b_pad)

    # Slice BEFORE the normalization: padded output rows hold the bias, not zeros.
    y = y_pad[:M, :N]
    # Global-max normalization kept outside the tiled kernel (cross-tile reduction).
    return y / jnp.max(y)


def bit_sliced_linear(x, w_stack, b_stack, num_slices, *,
                      tm=None, tn=None, tk=None, use_int8=None):
    cfg = _generation_config()
    if use_int8 is None:
        use_int8 = bool(cfg["int8"]) and num_slices <= 7
    try:
        return _bit_sliced_linear_impl(x, w_stack, b_stack, num_slices,
                                       tm, tn, tk, cfg, use_int8)
    except Exception:
        if not use_int8:
            raise
        # Defensive fallback: if the s8 x s8 MXU path fails to lower on this
        # TPU / toolchain, rerun with the (always-supported) bf16 operand path.
        return _bit_sliced_linear_impl(x, w_stack, b_stack, num_slices,
                                       tm, tn, tk, cfg, False)


def reference(x, w_stack, b_stack, num_slices):
    """Pure-JAX reference mirroring the PyTorch forward."""
    norm = 2 ** num_slices - 1
    xi = (x * norm).astype(jnp.int32)
    y = jnp.zeros((x.shape[0], w_stack.shape[-1]), jnp.float32)
    for i in range(num_slices):
        bit = ((xi >> i) & 1).astype(jnp.float32)
        y = y + (2.0 ** i) * (bit @ w_stack[i] + b_stack[i])
    return y / jnp.max(y)


if __name__ == "__main__":
    num_slices = 4
    in_features, out_features, batch = 32, 32, 8

    key = jax.random.PRNGKey(0)
    k_w, k_b, k_x = jax.random.split(key, 3)

    # Deterministic "analog" tile-0 weights in [-1, 1], shape (out_features, in_features)
    # (same orientation as nn.Linear / AnalogLinear.get_weights()).
    w0 = jax.random.uniform(k_w, (out_features, in_features), jnp.float32, -1.0, 1.0)

    # transfer_weights(): quantize to num_slices bits and split into binary weight slices.
    int_w = jnp.round((w0 + 1.0) / 2.0 * (2 ** num_slices - 1)).astype(jnp.int32)
    w_stack = jnp.stack(
        [((int_w >> i) & 1).astype(jnp.float32).T for i in range(num_slices)]
    )  # (num_slices, in_features, out_features)

    # Per-tile digital biases (set_weights only overwrites weights; each tile keeps its bias).
    bound = float(1.0 / (in_features ** 0.5))
    b_stack = jax.random.uniform(
        k_b, (num_slices, 1, out_features), jnp.float32, -bound, bound
    )

    x = jax.random.uniform(k_x, (batch, in_features), jnp.float32)

    y = bit_sliced_linear(x, w_stack, b_stack, num_slices)
    y = jax.block_until_ready(y)

    y_ref = reference(x, w_stack, b_stack, num_slices)
    assert y.shape == (batch, out_features)
    assert jnp.allclose(y, y_ref, atol=1e-5, rtol=1e-5), "kernel mismatch vs reference"

    print("KERNEL_OK")
</pallas_src>

<mosaic_0001>
module attributes {stable_mosaic.version = 11 : i64} {
  func.func @bit_sliced_linear_kernel(%arg0: i32, %arg1: i32, %arg2: i32, %arg3: memref<32x128xi8, #tpu.memory_space<vmem>>, %arg4: memref<4x128x128xbf16, #tpu.memory_space<vmem>>, %arg5: memref<1x128xf32, #tpu.memory_space<vmem>>, %arg6: memref<32x128xf32, #tpu.memory_space<vmem>>) attributes {dimension_semantics = [#tpu.dimension_semantics<parallel>, #tpu.dimension_semantics<parallel>, #tpu.dimension_semantics<arbitrary>], iteration_bounds = array<i64: 1, 1, 1>, scalar_prefetch = 0 : i64, scratch_operands = 0 : i64, tpu.core_type = #tpu.core_type<tc>, window_params = [{transform_indices = @transform_0, window_bounds = array<i64: 32, 128>}, {transform_indices = @transform_1, window_bounds = array<i64: 4, 128, 128>}, {transform_indices = @transform_2, window_bounds = array<i64: 1, 128>}, {transform_indices = @transform_3, window_bounds = array<i64: 32, 128>}]} {
    %c0 = arith.constant 0 : index
    %c0_0 = arith.constant 0 : index
    %0 = vector.load %arg3[%c0, %c0_0] : memref<32x128xi8, #tpu.memory_space<vmem>>, vector<32x128xi8>
    %1 = arith.extsi %0 : vector<32x128xi8> to vector<32x128xi32>
    %c0_i32 = arith.constant 0 : i32
    %2 = vector.broadcast %c0_i32 : i32 to vector<32x128xi32>
    %3 = arith.shrsi %1, %2 : vector<32x128xi32>
    %c1_i32 = arith.constant 1 : i32
    %4 = vector.broadcast %c1_i32 : i32 to vector<32x128xi32>
    %5 = arith.andi %3, %4 : vector<32x128xi32>
    %6 = arith.sitofp %5 : vector<32x128xi32> to vector<32x128xbf16>
    %c0_1 = arith.constant 0 : index
    %c0_2 = arith.constant 0 : index
    %c0_3 = arith.constant 0 : index
    %7 = vector.load %arg4[%c0_1, %c0_2, %c0_3] : memref<4x128x128xbf16, #tpu.memory_space<vmem>>, vector<1x128x128xbf16>
    %8 = vector.shape_cast %7 : vector<1x128x128xbf16> to vector<128x128xbf16>
    %cst = arith.constant dense<0.000000e+00> : vector<32x128xf32>
    %9 = tpu.matmul %6, %8, %cst {dimension_numbers = #tpu.dot_dimension_numbers<[1], [0], [0], [1], [0, 0, 1, 1], [], []>} : vector<32x128xbf16>, vector<128x128xbf16>, vector<32x128xf32> -> vector<32x128xf32>
    %c1_i32_4 = arith.constant 1 : i32
    %10 = vector.broadcast %c1_i32_4 : i32 to vector<32x128xi32>
    %11 = arith.shrsi %1, %10 : vector<32x128xi32>
    %c1_i32_5 = arith.constant 1 : i32
    %12 = vector.broadcast %c1_i32_5 : i32 to vector<32x128xi32>
    %13 = arith.andi %11, %12 : vector<32x128xi32>
    %14 = arith.sitofp %13 : vector<32x128xi32> to vector<32x128xbf16>
    %c1 = arith.constant 1 : index
    %c0_6 = arith.constant 0 : index
    %c0_7 = arith.constant 0 : index
    %15 = vector.load %arg4[%c1, %c0_6, %c0_7] : memref<4x128x128xbf16, #tpu.memory_space<vmem>>, vector<1x128x128xbf16>
    %16 = vector.shape_cast %15 : vector<1x128x128xbf16> to vector<128x128xbf16>
    %cst_8 = arith.constant dense<0.000000e+00> : vector<32x128xf32>
    %17 = tpu.matmul %14, %16, %cst_8 {dimension_numbers = #tpu.dot_dimension_numbers<[1], [0], [0], [1], [0, 0, 1, 1], [], []>} : vector<32x128xbf16>, vector<128x128xbf16>, vector<32x128xf32> -> vector<32x128xf32>
    %18 = arith.addf %9, %17 : vector<32x128xf32>
    %c2_i32 = arith.constant 2 : i32
    %19 = vector.broadcast %c2_i32 : i32 to vector<32x128xi32>
    %20 = arith.shrsi %1, %19 : vector<32x128xi32>
    %c1_i32_9 = arith.constant 1 : i32
    %21 = vector.broadcast %c1_i32_9 : i32 to vector<32x128xi32>
    %22 = arith.andi %20, %21 : vector<32x128xi32>
    %23 = arith.sitofp %22 : vector<32x128xi32> to vector<32x128xbf16>
    %c2 = arith.constant 2 : index
    %c0_10 = arith.constant 0 : index
    %c0_11 = arith.constant 0 : index
    %24 = vector.load %arg4[%c2, %c0_10, %c0_11] : memref<4x128x128xbf16, #tpu.memory_space<vmem>>, vector<1x128x128xbf16>
    %25 = vector.shape_cast %24 : vector<1x128x128xbf16> to vector<128x128xbf16>
    %cst_12 = arith.constant dense<0.000000e+00> : vector<32x128xf32>
    %26 = tpu.matmul %23, %25, %cst_12 {dimension_numbers = #tpu.dot_dimension_numbers<[1], [0], [0], [1], [0, 0, 1, 1], [], []>} : vector<32x128xbf16>, vector<128x128xbf16>, vector<32x128xf32> -> vector<32x128xf32>
    %27 = arith.addf %18, %26 : vector<32x128xf32>
    %c3_i32 = arith.constant 3 : i32
    %28 = vector.broadcast %c3_i32 : i32 to vector<32x128xi32>
    %29 = arith.shrsi %1, %28 : vector<32x128xi32>
    %c1_i32_13 = arith.constant 1 : i32
    %30 = vector.broadcast %c1_i32_13 : i32 to vector<32x128xi32>
    %31 = arith.andi %29, %30 : vector<32x128xi32>
    %32 = arith.sitofp %31 : vector<32x128xi32> to vector<32x128xbf16>
    %c3 = arith.constant 3 : index
    %c0_14 = arith.constant 0 : index
    %c0_15 = arith.constant 0 : index
    %33 = vector.load %arg4[%c3, %c0_14, %c0_15] : memref<4x128x128xbf16, #tpu.memory_space<vmem>>, vector<1x128x128xbf16>
    %34 = vector.shape_cast %33 : vector<1x128x128xbf16> to vector<128x128xbf16>
    %cst_16 = arith.constant dense<0.000000e+00> : vector<32x128xf32>
    %35 = tpu.matmul %32, %34, %cst_16 {dimension_numbers = #tpu.dot_dimension_numbers<[1], [0], [0], [1], [0, 0, 1, 1], [], []>} : vector<32x128xbf16>, vector<128x128xbf16>, vector<32x128xf32> -> vector<32x128xf32>
    %36 = arith.addf %27, %35 : vector<32x128xf32>
    %c0_i32_17 = arith.constant 0 : i32
    %37 = arith.cmpi eq, %arg2, %c0_i32_17 : i32
    %38 = arith.extui %37 : i1 to i32
    %c0_i32_18 = arith.constant 0 : i32
    %39 = arith.cmpi ne, %38, %c0_i32_18 : i32
    scf.if %39 {
      %c0_21 = arith.constant 0 : index
      %c0_22 = arith.constant 0 : index
      %43 = vector.load %arg5[%c0_21, %c0_22] : memref<1x128xf32, #tpu.memory_space<vmem>>, vector<1x128xf32>
      %44 = vector.broadcast %43 : vector<1x128xf32> to vector<32x128xf32>
      %45 = arith.addf %36, %44 : vector<32x128xf32>
      %c0_23 = arith.constant 0 : index
      %c0_24 = arith.constant 0 : index
      %46 = vector.load %arg6[%c0_23, %c0_24] : memref<32x128xf32, #tpu.memory_space<vmem>>, vector<32x128xf32>
      tpu.vector_store %arg6[%c0_23, %c0_24], %45 {strides = array<i32>} : memref<32x128xf32, #tpu.memory_space<vmem>>, vector<32x128xf32>,
    } else {
    }
    %c0_i32_19 = arith.constant 0 : i32
    %40 = arith.cmpi sgt, %arg2, %c0_i32_19 : i32
    %41 = arith.extui %40 : i1 to i32
    %c0_i32_20 = arith.constant 0 : i32
    %42 = arith.cmpi ne, %41, %c0_i32_20 : i32
    scf.if %42 {
      %c0_21 = arith.constant 0 : index
      %c0_22 = arith.constant 0 : index
      %43 = vector.load %arg6[%c0_21, %c0_22] : memref<32x128xf32, #tpu.memory_space<vmem>>, vector<32x128xf32>
      %44 = arith.addf %43, %36 : vector<32x128xf32>
      %c0_23 = arith.constant 0 : index
      %c0_24 = arith.constant 0 : index
      %45 = vector.load %arg6[%c0_23, %c0_24] : memref<32x128xf32, #tpu.memory_space<vmem>>, vector<32x128xf32>
      tpu.vector_store %arg6[%c0_23, %c0_24], %44 {strides = array<i32>} : memref<32x128xf32, #tpu.memory_space<vmem>>, vector<32x128xf32>,
    } else {
    }
    return
  }
  func.func @transform_0(%arg0: i32, %arg1: i32, %arg2: i32) -> (i32, i32) {
    %c0_i32 = arith.constant 0 : i32
    return %arg0, %arg2 : i32, i32
  }
  func.func @transform_1(%arg0: i32, %arg1: i32, %arg2: i32) -> (i32, i32, i32) {
    %c0_i32 = arith.constant 0 : i32
    %c0_i32_0 = arith.constant 0 : i32
    return %c0_i32, %arg2, %arg1 : i32, i32, i32
  }
  func.func @transform_2(%arg0: i32, %arg1: i32, %arg2: i32) -> (i32, i32) {
    %c0_i32 = arith.constant 0 : i32
    %c0_i32_0 = arith.constant 0 : i32
    return %c0_i32, %arg1 : i32, i32
  }
  func.func @transform_3(%arg0: i32, %arg1: i32, %arg2: i32) -> (i32, i32) {
    %c0_i32 = arith.constant 0 : i32
    return %arg0, %arg1 : i32, i32
  }
}

</mosaic_0001>

<bundles_post_ra>
// kernel: tpu_custom_call.1
= control target key start
LH: loop header
LB: loop body
LE: loop exit
PB: predicated region body
PF: predicated region fallthrough
CT: control target
= control target key end

     0   :  { %8 = vsyncpa [#allocation3], 0  ;;  %s924_s0 = inlined_call_operand.hbm [shape: s8[32,128], index: 0, kind: input, shape index: {}]   ;;  %s925_s1 = inlined_call_operand.hbm [shape: bf16[4,128,128], index: 1, kind: input, shape index: {}]   ;;  %s926_s2 = inlined_call_operand.vmem [shape: f32[1,128], index: 2, kind: input, shape index: {}]   ;;  %s927_s3 = inlined_call_operand.hbm [shape: f32[32,128], index: 3, kind: output, shape index: {}]  }
   0x1   :  { %9 = vsyncpa [#allocation6], 0 }
   0x2   :  { %10 = vsyncpa [#allocation4], 0  ;;  %s873_s12 = smov [#allocation2]   ;;  %s874_s14 = smov [#allocation5]  }
   0x3   :  { %s17_s13 = sshll.u32 %s873_s12, 4  ;;  %s26_s15 = sshll.u32 %s874_s14, 4  ;;  %s18_s13 = int_to_ptr.vmem [resolvable:$true] %s17_s13  ;;  %s27_s15 = int_to_ptr.vmem [resolvable:$true] %s26_s15 }
   0x4   :  { %s815_s16 = scalar_lea.vmem %s18_s13, 128  ;;  %p820_p1 = scmp.lt.s32.totalorder %s18_s13, %s18_s13 }
   0x5   :  { %p816_p0 = scmp.ne.s32.totalorder %s18_s13, %s815_s16  ;;  %p821_p2 = scmp.lt.s32.totalorder %s815_s16, %s815_s16 }
   0x7   :  { %p822_p3 = por %p821_p2, %p820_p1 }
   0x9   :  { %p823_p4 = pnand %p822_p3, %p816_p0 }
   0xb   :  { %826 = shalt.err (!%p823_p4)
}
   0xc   :  { %20 = dma.hbm_to_vmem [thread:$0]  %s924_s0, 128, %s18_s13, [#allocation3]  }
   0xd   :  { %s835_s19 = scalar_lea.vmem %s27_s15, 4096  ;;  %p840_p6 = scmp.lt.s32.totalorder %s27_s15, %s27_s15 }
   0xe   :  { %p836_p5 = scmp.ne.s32.totalorder %s27_s15, %s835_s19  ;;  %p841_p7 = scmp.lt.s32.totalorder %s835_s19, %s835_s19 }
  0x10   :  { %p842_p8 = por %p841_p7, %p840_p6 }
  0x12   :  { %p843_p9 = pnand %p842_p8, %p836_p5 }
  0x14   :  { %846 = shalt.err (!%p843_p9)
}
  0x15   :  { %s875_s20 = smov 64   ;;  %s876_s21 = smov 4  }
  0x16   :  { %32 = dma.hbm_to_vmem [thread:$0]  %s925_s1, 4096, %s27_s15, [#allocation6], %s875_s20, %s875_s20, %s876_s21  }
  0x17   :  { %867 = dma.done.wait [#allocation3], 128  }
  0x18   :  { %868 = vsyncadd [#allocation3], 4294967168 }
  0x19   :  { %869 = dma.done.wait [#allocation6], 4096  }
  0x1a   :  { %870 = vsyncadd [#allocation6], 4294963200  ;;  %v775_v0 = vld [vmem:[#allocation5 + $0x78] sm:$0xff]   ;;  %v777_v2 = vld [vmem:[#allocation5 + $0x70] sm:$0xff]   ;;  %s877_s24 = smov [#allocation7]  }
  0x1b   :  { %v776_v1 = vld [vmem:[#allocation5 + $0x38] sm:$0xff]   ;;  %688 = vmatprep.subr.bf16.mxu0 %v775_v0  ;;  %v778_v3 = vld [vmem:[#allocation5 + $0x30] sm:$0xff]   ;;  %v779_v4 = vld [vmem:[#allocation5 + $0x68] sm:$0xff]   ;;  %s602_s25 = sshll.u32 %s877_s24, 4  ;;  %s603_s25 = int_to_ptr.vmem [resolvable:$true] %s602_s25 }
  0x1c   :  { %708 = vmatprep.subr.bf16.mxu1 %v776_v1  ;;  %689 = vmatpush3.bf16.msra.mxu0 %v775_v0  ;;  %v780_v5 = vld [vmem:[#allocation5 + $0x28] sm:$0xff]   ;;  %v781_v6 = vld [vmem:[#allocation5 + $0x60] sm:$0xff]   ;;  %v783_v8 = vld [vmem:[#allocation5 + $0x58] sm:$0xff]   ;;  %p852_p11 = scmp.lt.s32.totalorder %s603_s25, %s603_s25 }
  0x1d   :  { %709 = vmatpush3.bf16.msra.mxu1 %v776_v1  ;;  %690 = vmatprep.subr.bf16.mxu0 %v777_v2  ;;  %v782_v7 = vld [vmem:[#allocation5 + $0x20] sm:$0xff]   ;;  %v784_v9 = vld [vmem:[#allocation5 + $0x18] sm:$0xff]   ;;  %v785_v10 = vld [vmem:[#allocation5 + $0x50] sm:$0xff]  }
  0x1e   :  { %710 = vmatprep.subr.bf16.mxu1 %v778_v3  ;;  %v42_v11 = vld [vmem:[#allocation2] sm:$0xff]  ;;  %v786_v12 = vld [vmem:[#allocation5 + $0x10] sm:$0xff]   ;;  %v787_v21 = vld [vmem:[#allocation5 + $0x48] sm:$0xff]  }
  0x1f   :  { %v43_v13 = vunpack.c.0.s8 %v42_v11  ;;  %v44_v14 = vunpack.c.1.s8 %v42_v11  ;;  %v906_v15 = vunpack.c.2.s8 %v42_v11  ;;  %v908_v16 = vunpack.c.3.s8 %v42_v11  ;;  %v788_v22 = vld [vmem:[#allocation5 + $0x8] sm:$0xff]   ;;  %v789_v36 = vld [vmem:[#allocation5 + $0x40] sm:$0xff]   ;;  %v791_v47 = vld [vmem:[#allocation5 + $0xb8] sm:$0xff]  }
  0x20   :  { %691 = vmatpush3.bf16.msra.mxu0 %v777_v2  ;;  %v790_v38 = vld [vmem:[#allocation5] sm:$0xff]   ;;  %v792_v49 = vld [vmem:[#allocation5 + $0xf8] sm:$0xff]   ;;  %v793_v57 = vld [vmem:[#allocation5 + $0xb0] sm:$0xff]  }
  0x21   :  { %711 = vmatpush3.bf16.msra.mxu1 %v778_v3  ;;  %692 = vmatprep.subr.bf16.mxu0 %v779_v4  ;;  %v73_v17 = vshra.s32 %v43_v13, 1  ;;  %v74_v18 = vshra.s32 %v44_v14, 1  ;;  %v47_v19 = vand.u32 1, %v43_v13  ;;  %v48_v20 = vand.u32 1, %v44_v14  ;;  %v794_v59 = vld [vmem:[#allocation5 + $0xf0] sm:$0xff]   ;;  %v795_v63 = vld [vmem:[#allocation5 + $0xa8] sm:$0xff]  }
  0x22   :  { %712 = vmatprep.subr.bf16.mxu1 %v780_v5  ;;  %v75_v23 = vshra.s32 %v906_v15, 1  ;;  %v76_v24 = vshra.s32 %v908_v16, 1  ;;  %v49_v31 = vand.u32 1, %v906_v15  ;;  %v50_v32 = vand.u32 1, %v908_v16  ;;  %v796_v0 = vld [vmem:[#allocation5 + $0xe8] sm:$0xff]   ;;  %v797_v1 = vld [vmem:[#allocation5 + $0xa0] sm:$0xff]  }
  0x23   :  { %v77_v25 = vand.u32 1, %v73_v17  ;;  %v78_v26 = vand.u32 1, %v74_v18  ;;  %v51_v27 = vcvt.s32.f32 %v47_v19  ;;  %v52_v28 = vcvt.s32.f32 %v48_v20  ;;  %v798_v2 = vld [vmem:[#allocation5 + $0xe0] sm:$0xff]   ;;  %v799_v3 = vld [vmem:[#allocation5 + $0x98] sm:$0xff]   ;;  %v803_v11 = vld [vmem:[#allocation5 + $0x88] sm:$0xff]  }
  0x24   :  { %693 = vmatpush3.bf16.msra.mxu0 %v779_v4  ;;  %v79_v29 = vand.u32 1, %v75_v23  ;;  %v80_v30 = vand.u32 1, %v76_v24  ;;  %v298_v37 = vshra.s32 %v43_v13, 2  ;;  %v299_v40 = vshra.s32 %v44_v14, 2  ;;  %v800_v4 = vld [vmem:[#allocation5 + $0xd8] sm:$0xff]   ;;  %v805_v19 = vld [vmem:[#allocation5 + $0x80] sm:$0xff]  }
  0x25   :  { %713 = vmatpush3.bf16.msra.mxu1 %v780_v5  ;;  %694 = vmatprep.subr.bf16.mxu0 %v781_v6  ;;  %v81_v33 = vcvt.s32.f32 %v77_v25  ;;  %v82_v34 = vcvt.s32.f32 %v78_v26  ;;  %v55_v35 = vpack.c.bf16 %v52_v28, %v51_v27  ;;  %v53_v44 = vcvt.s32.f32 %v49_v31  ;;  %v801_v5 = vld [vmem:[#allocation5 + $0x90] sm:$0xff]   ;;  %v806_v20 = vld [vmem:[#allocation5 + $0xc0] sm:$0xff]  }
  0x26   :  { %714 = vmatprep.subr.bf16.mxu1 %v782_v7  ;;  %v83_v41 = vcvt.s32.f32 %v79_v29  ;;  %v84_v42 = vcvt.s32.f32 %v80_v30  ;;  %v302_v43 = vand.u32 1, %v298_v37  ;;  %v54_v45 = vcvt.s32.f32 %v50_v32 }
  0x27   :  { %v85_v39 = vpack.c.bf16 %v82_v34, %v81_v33  ;;  %724 = vmatprep.mubr.bf16.mxu1 %v55_v35  ;;  %v303_v46 = vand.u32 1, %v299_v40  ;;  %v430_v48 = vshra.s32 %v43_v13, 3  ;;  %v431_v52 = vshra.s32 %v44_v14, 3 }
  0x28   :  { %695 = vmatpush3.bf16.msra.mxu0 %v781_v6  ;;  %v306_v50 = vcvt.s32.f32 %v302_v43  ;;  %v86_v53 = vpack.c.bf16 %v84_v42, %v83_v41  ;;  %v56_v55 = vpack.c.bf16 %v54_v45, %v53_v44  ;;  %v802_v6 = vld [vmem:[#allocation5 + $0xd0] sm:$0xff]  }
  0x29   :  { %715 = vmatpush3.bf16.msra.mxu1 %v782_v7  ;;  %696 = vmatprep.subr.bf16.mxu0 %v783_v8  ;;  %v307_v51 = vcvt.s32.f32 %v303_v46  ;;  %v434_v54 = vand.u32 1, %v430_v48  ;;  %v435_v56 = vand.u32 1, %v431_v52  ;;  %v300_v7 = vshra.s32 %v906_v15, 2 }
  0x2a   :  { %716 = vmatprep.subr.bf16.mxu1 %v784_v9  ;;  %704 = vmatprep.mubr.bf16.mxu0 %v85_v39 }
  0x2b   :  { %v438_v58 = vcvt.s32.f32 %v434_v54  ;;  %v310_v60 = vpack.c.bf16 %v307_v51, %v306_v50  ;;  %v439_v61 = vcvt.s32.f32 %v435_v56  ;;  %v304_v13 = vand.u32 1, %v300_v7 }
  0x2c   :  { %697 = vmatpush3.bf16.msra.mxu0 %v783_v8  ;;  %v301_v8 = vshra.s32 %v908_v16, 2 }
  0x2d   :  { %717 = vmatpush3.bf16.msra.mxu1 %v784_v9  ;;  %698 = vmatprep.subr.bf16.mxu0 %v785_v10  ;;  %v442_v62 = vpack.c.bf16 %v439_v61, %v438_v58  ;;  %v432_v9 = vshra.s32 %v906_v15, 3 }
  0x2e   :  { %718 = vmatprep.subr.bf16.mxu1 %v786_v12  ;;  %v305_v14 = vand.u32 1, %v301_v8 }
  0x2f   :  { %v436_v17 = vand.u32 1, %v432_v9 }
  0x30   :  { %699 = vmatpush3.bf16.msra.mxu0 %v785_v10  ;;  %v433_v10 = vshra.s32 %v908_v16, 3 }
  0x31   :  { %719 = vmatpush3.bf16.msra.mxu1 %v786_v12  ;;  %700 = vmatprep.subr.bf16.mxu0 %v787_v21  ;;  %v804_v12 = vld [vmem:[#allocation5 + $0xc8] sm:$0xff]   ;;  %v440_v15 = vcvt.s32.f32 %v436_v17 }
  0x32   :  { %720 = vmatprep.subr.bf16.mxu1 %v788_v22  ;;  %v437_v18 = vand.u32 1, %v433_v10 }
  0x34   :  { %701 = vmatpush3.bf16.msra.mxu0 %v787_v21  ;;  %v308_v21 = vcvt.s32.f32 %v304_v13  ;;  %v441_v16 = vcvt.s32.f32 %v437_v18 }
  0x35   :  { %721 = vmatpush3.bf16.msra.mxu1 %v788_v22  ;;  %702 = vmatprep.subr.bf16.mxu0 %v789_v36  ;;  %v309_v22 = vcvt.s32.f32 %v305_v14 }
  0x36   :  { %722 = vmatprep.subr.bf16.mxu1 %v790_v38  ;;  %v443_v24 = vpack.c.bf16 %v441_v16, %v440_v15 }
  0x37   :  { %v311_v23 = vpack.c.bf16 %v309_v22, %v308_v21 }
  0x38   :  { %703 = vmatpush3.bf16.msra.mxu0 %v789_v36 }
  0x39   :  { %723 = vmatpush3.bf16.msra.mxu1 %v790_v38  ;;  %728 = vmatprep.subr.bf16.mxu0 %v791_v47  ;;  %v647_v38 = vld [vmem:[%s926_s2] ss:$0 sm:$0xff]  ;;  %s847_s2 = scalar_lea.vmem %s603_s25, 512 }
  0x3a   :  { %748 = vmatprep.subr.bf16.mxu1 %v792_v49  ;;  %p848_p10 = scmp.ne.s32.totalorder %s603_s25, %s847_s2  ;;  %p853_p12 = scmp.lt.s32.totalorder %s847_s2, %s847_s2 }
  0x3b   :  { %705 = vmatmul.mubr.bf16.vlgmr.msra.gmra.mxu0 %v86_v53 }
  0x3c   :  { %725 = vmatmul.mubr.bf16.vlgmr.msra.gmra.mxu1 %v56_v55  ;;  %729 = vmatpush3.bf16.msra.mxu0 %v791_v47  ;;  %p854_p13 = por %p853_p12, %p852_p11 }
  0x3d   :  { %749 = vmatpush3.bf16.msra.mxu1 %v792_v49  ;;  %730 = vmatprep.subr.bf16.mxu0 %v793_v57 }
  0x3e   :  { %750 = vmatprep.subr.bf16.mxu1 %v794_v59  ;;  %744 = vmatprep.mubr.bf16.mxu0 %v310_v60  ;;  %p855_p0 = pnand %p854_p13, %p848_p10 }
  0x3f   :  { %764 = vmatprep.mubr.bf16.mxu1 %v442_v62 }
  0x40   :  { %731 = vmatpush3.bf16.msra.mxu0 %v793_v57 }
  0x41   :  { %751 = vmatpush3.bf16.msra.mxu1 %v794_v59  ;;  %732 = vmatprep.subr.bf16.mxu0 %v795_v63 }
  0x42   :  { %752 = vmatprep.subr.bf16.mxu1 %v796_v0 }
  0x44   :  { %733 = vmatpush3.bf16.msra.mxu0 %v795_v63 }
  0x45   :  { %753 = vmatpush3.bf16.msra.mxu1 %v796_v0  ;;  %734 = vmatprep.subr.bf16.mxu0 %v797_v1 }
  0x46   :  { %754 = vmatprep.subr.bf16.mxu1 %v798_v2 }
  0x48   :  { %735 = vmatpush3.bf16.msra.mxu0 %v797_v1 }
  0x49   :  { %755 = vmatpush3.bf16.msra.mxu1 %v798_v2  ;;  %736 = vmatprep.subr.bf16.mxu0 %v799_v3 }
  0x4a   :  { %756 = vmatprep.subr.bf16.mxu1 %v800_v4 }
  0x4c   :  { %737 = vmatpush3.bf16.msra.mxu0 %v799_v3 }
  0x4d   :  { %757 = vmatpush3.bf16.msra.mxu1 %v800_v4  ;;  %738 = vmatprep.subr.bf16.mxu0 %v801_v5 }
  0x4e   :  { %758 = vmatprep.subr.bf16.mxu1 %v802_v6 }
  0x50   :  { %739 = vmatpush3.bf16.msra.mxu0 %v801_v5 }
  0x51   :  { %759 = vmatpush3.bf16.msra.mxu1 %v802_v6  ;;  %740 = vmatprep.subr.bf16.mxu0 %v803_v11 }
  0x52   :  { %760 = vmatprep.subr.bf16.mxu1 %v804_v12 }
  0x54   :  { %741 = vmatpush3.bf16.msra.mxu0 %v803_v11 }
  0x55   :  { %761 = vmatpush3.bf16.msra.mxu1 %v804_v12  ;;  %742 = vmatprep.subr.bf16.mxu0 %v805_v19 }
  0x56   :  { %762 = vmatprep.subr.bf16.mxu1 %v806_v20 }
  0x58   :  { %743 = vmatpush3.bf16.msra.mxu0 %v805_v19 }
  0x59   :  { %763 = vmatpush3.bf16.msra.mxu1 %v806_v20 }
  0x5b   :  { %745 = vmatmul.mubr.bf16.vlgmr.msra.gmra.mxu0 %v311_v23 }
  0x5c   :  { %765 = vmatmul.mubr.bf16.vlgmr.msra.gmra.mxu1 %v443_v24 }
  0xfb   :  { %v706_v25 = vpop.f32.mrf.mxu0 }
  0xfc   :  { %v726_v26 = vpop.f32.mrf.mxu1 }
  0xfd   :  { %v186_v27 = vpop.f32.mrf.mxu0  ;;  %v292_v32 = vadd.f32 %v726_v26, %v706_v25 }
  0xfe   :  { %v283_v28 = vpop.f32.mrf.mxu1 }
  0xff   :  { %v707_v29 = vpop.f32.mrf.mxu0  ;;  %v284_v35 = vadd.f32 %v283_v28, %v186_v27 }
 0x100   :  { %v727_v30 = vpop.f32.mrf.mxu1 }
 0x101   :  { %v189_v31 = vpop.f32.mrf.mxu0  ;;  %v295_v40 = vadd.f32 %v727_v30, %v707_v29 }
 0x102   :  { %v286_v33 = vpop.f32.mrf.mxu1 }
 0x103   :  { %v287_v45 = vadd.f32 %v286_v33, %v189_v31 }
 0x11b   :  { %v746_v34 = vpop.f32.mrf.mxu0 }
 0x11c   :  { %v428_v36 = vadd.f32 %v746_v34, %v292_v32  ;;  %v766_v37 = vpop.f32.mrf.mxu1 }
 0x11d   :  { %v411_v39 = vpop.f32.mrf.mxu0 }
 0x11e   :  { %v560_v41 = vadd.f32 %v766_v37, %v428_v36  ;;  %v426_v42 = vadd.f32 %v411_v39, %v284_v35  ;;  %v543_v43 = vpop.f32.mrf.mxu1 }
 0x11f   :  { %v747_v44 = vpop.f32.mrf.mxu0 }
 0x120   :  { %v575_v46 = vadd.f32 %v647_v38, %v560_v41  ;;  %v558_v47 = vadd.f32 %v543_v43, %v426_v42  ;;  %v429_v48 = vadd.f32 %v747_v44, %v295_v40  ;;  %v767_v49 = vpop.f32.mrf.mxu1 }
 0x121   :  { %v414_v50 = vpop.f32.mrf.mxu0 }
 0x122   :  { %579 = vst [vmem:[#allocation7 + $0x10] sm:$0xff] %v575_v46  ;;  %v573_v51 = vadd.f32 %v647_v38, %v558_v47  ;;  %v561_v52 = vadd.f32 %v767_v49, %v429_v48  ;;  %v427_v53 = vadd.f32 %v414_v50, %v287_v45  ;;  %v546_v54 = vpop.f32.mrf.mxu1 }
 0x124   :  { %577 = vst [vmem:[#allocation7] sm:$0xff] %v573_v51  ;;  %v576_v55 = vadd.f32 %v647_v38, %v561_v52  ;;  %v559_v56 = vadd.f32 %v546_v54, %v427_v53 }
 0x126   :  { %580 = vst [vmem:[#allocation7 + $0x18] sm:$0xff] %v576_v55  ;;  %v574_v57 = vadd.f32 %v647_v38, %v559_v56 }
 0x128   :  { %578 = vst [vmem:[#allocation7 + $0x8] sm:$0xff] %v574_v57 }
 0x129   :  { %858 = shalt.err (!%p855_p0)
}
 0x12a   :  { %s878_s26 = smov 128   ;;  %s879_s27 = smov 8  }
 0x12b   :  { %608 = dma.vmem_to_hbm [thread:$0]  %s603_s25, 512, %s927_s3, [#allocation4], %s878_s26, %s878_s26, %s879_s27  }
 0x12c   :  { %871 = dma.done.wait [#allocation4], 512  }
 0x12d   :  { %872 = vsyncadd [#allocation4], 4294966784 }
 0x12e   :  { %612 = vsyncpa [#allocation3], 1 }
 0x12f   :  { %613 = vsyncpa [#allocation6], 1 }
 0x130   :  { %614 = vsyncpa [#allocation4], 1 }

</bundles_post_ra>
